<compile_context>
chip_gen: v7x
topology: tpu7x:2x2x1
jax: 0.10.0
libtpu: 0.0.40
codegen_flags: <defaults>
</compile_context>

<pallas_src>
import jax
import jax.numpy as jnp
from jax.experimental import pallas as pl
from jax.experimental.pallas import tpu as pltpu

_LANE = 128
_SINGLE_BLOCK_MAX_ROWS = 1024   # <= ~512 KiB/operand -> gridless single block


def _row_tile_for_device():
    # v7x: 8192-row tiles (4 MiB/block; 3 operands x 2 buffers = 24 MiB) keep
    # per-step overhead <10% at 3.2 TB/s HBM and fit the 32 MiB scoped default.
    # v5e/v6e: 4096-row tiles (12 MiB double-buffered) fit v5e's 16 MiB scoped
    # VMEM default with headroom.
    try:
        kind = jax.devices()[0].device_kind.lower()
    except Exception:
        kind = ""
    return 8192 if "v7" in kind else 4096


_ROW_TILE = _row_tile_for_device()


def _add_kernel(a_ref, b_ref, o_ref):
    o_ref[...] = a_ref[...] + b_ref[...]


def _cost(n_elem, itemsize):
    # Tiny, memory-bound custom call: tell XLA so it schedules around it.
    return pl.CostEstimate(flops=n_elem, transcendentals=0,
                           bytes_accessed=3 * itemsize * n_elem)


def _pallas_add_2d(a, b):
    """Elementwise add of two lane-dense (rows, 128) arrays."""
    rows = a.shape[0]
    n_elem = a.size
    itemsize = a.dtype.itemsize

    if rows <= _SINGLE_BLOCK_MAX_ROWS:
        # Gridless: whole problem as one VMEM-resident block (full-array block
        # shape bypasses the (8,128) divisibility rule). One DMA in per
        # operand, one out, zero grid bookkeeping.
        return pl.pallas_call(
            _add_kernel,
            out_shape=jax.ShapeDtypeStruct(a.shape, a.dtype),
            in_specs=[
                pl.BlockSpec(memory_space=pltpu.VMEM),
                pl.BlockSpec(memory_space=pltpu.VMEM),
            ],
            out_specs=pl.BlockSpec(memory_space=pltpu.VMEM),
            cost_estimate=_cost(n_elem, itemsize),
        )(a, b)

    # Large-input path: big row tiles, double-buffered pipeline, parallel grid
    # axis (also lets v7x shard across its two TensorCores).
    tile = _ROW_TILE
    grid = (pl.cdiv(rows, tile),)
    return pl.pallas_call(
        _add_kernel,
        out_shape=jax.ShapeDtypeStruct(a.shape, a.dtype),
        grid=grid,
        in_specs=[
            pl.BlockSpec((tile, _LANE), lambda i: (i, 0)),
            pl.BlockSpec((tile, _LANE), lambda i: (i, 0)),
        ],
        out_specs=pl.BlockSpec((tile, _LANE), lambda i: (i, 0)),
        compiler_params=pltpu.CompilerParams(
            dimension_semantics=("parallel",)
        ),
        cost_estimate=_cost(n_elem, itemsize),
    )(a, b)


def _pallas_add_impl(x, y):
    assert x.shape == y.shape and x.dtype == y.dtype
    n_elem = x.size

    if n_elem % _LANE == 0:
        # Module's case: 31360 = 245 * 128 -> exact lane-dense reshape (bitcast).
        rows = n_elem // _LANE
        out = _pallas_add_2d(x.reshape(rows, _LANE), y.reshape(rows, _LANE))
        return out.reshape(x.shape)

    # Generic fallback (not hit by the module): pad flat to a lane multiple,
    # add, slice back. Keeps the wrapper robust for arbitrary element counts.
    pad = (-n_elem) % _LANE
    a = jnp.pad(x.reshape(-1), (0, pad)).reshape(-1, _LANE)
    b = jnp.pad(y.reshape(-1), (0, pad)).reshape(-1, _LANE)
    out = _pallas_add_2d(a, b)
    return out.reshape(-1)[:n_elem].reshape(x.shape)


pallas_add = jax.jit(_pallas_add_impl)


if __name__ == "__main__":
    key = jax.random.PRNGKey(0)
    k1, k2 = jax.random.split(key)
    # Shapes from the module: [1, 40, 28, 28]
    x54 = jax.random.normal(k1, (1, 40, 28, 28), dtype=jnp.float32)
    x40 = jax.random.normal(k2, (1, 40, 28, 28), dtype=jnp.float32)

    out = pallas_add(x54, x40)
    out = jax.block_until_ready(out)

    ref = x54 + x40
    assert out.shape == (1, 40, 28, 28)
    assert jnp.allclose(out, ref, atol=1e-6, rtol=1e-6)
    print("KERNEL_OK")
</pallas_src>

<mosaic_0001>
module attributes {stable_mosaic.version = 11 : i64} {
  func.func @_add_kernel(%arg0: memref<245x128xf32, #tpu.memory_space<vmem>>, %arg1: memref<245x128xf32, #tpu.memory_space<vmem>>, %arg2: memref<245x128xf32, #tpu.memory_space<vmem>>) attributes {dimension_semantics = [], scalar_prefetch = 0 : i64, scratch_operands = 0 : i64, tpu.core_type = #tpu.core_type<tc>} {
    %c0 = arith.constant 0 : index
    %c0_0 = arith.constant 0 : index
    %0 = vector.load %arg0[%c0, %c0_0] : memref<245x128xf32, #tpu.memory_space<vmem>>, vector<245x128xf32>
    %c0_1 = arith.constant 0 : index
    %c0_2 = arith.constant 0 : index
    %1 = vector.load %arg1[%c0_1, %c0_2] : memref<245x128xf32, #tpu.memory_space<vmem>>, vector<245x128xf32>
    %2 = arith.addf %0, %1 : vector<245x128xf32>
    %c0_3 = arith.constant 0 : index
    %c0_4 = arith.constant 0 : index
    %3 = vector.load %arg2[%c0_3, %c0_4] : memref<245x128xf32, #tpu.memory_space<vmem>>, vector<245x128xf32>
    tpu.vector_store %arg2[%c0_3, %c0_4], %2 {strides = array<i32>} : memref<245x128xf32, #tpu.memory_space<vmem>>, vector<245x128xf32>,
    return
  }
}

</mosaic_0001>

<bundles_post_ra>
// kernel: _pallas_add_impl.1
= control target key start
LH: loop header
LB: loop body
LE: loop exit
PB: predicated region body
PF: predicated region fallthrough
CT: control target
= control target key end

     0   :  { %s433_s0 = inlined_call_operand.vmem [shape: f32[245,128], index: 0, kind: input, shape index: {}]   ;;  %s434_s1 = inlined_call_operand.vmem [shape: f32[245,128], index: 1, kind: input, shape index: {}]   ;;  %s435_s2 = inlined_call_operand.vmem [shape: f32[245,128], index: 2, kind: output, shape index: {}]  }
   0x1   :  { %v11_v0 = vld [vmem:[%s433_s0] sm:$0xff]  ;;  %v12_v2 = vld [vmem:[%s433_s0 + $0x8] sm:$0xff]  ;;  %v13_v5 = vld [vmem:[%s433_s0 + $0x10] sm:$0xff] }
   0x2   :  { %v42_v1 = vld [vmem:[%s434_s1] sm:$0xff]  ;;  %v43_v4 = vld [vmem:[%s434_s1 + $0x8] sm:$0xff]  ;;  %v44_v6 = vld [vmem:[%s434_s1 + $0x10] sm:$0xff] }
   0x3   :  { %v73_v3 = vadd.f32 %v42_v1, %v11_v0  ;;  %v74_v7 = vadd.f32 %v43_v4, %v12_v2  ;;  %v75_v8 = vadd.f32 %v44_v6, %v13_v5  ;;  %v14_v9 = vld [vmem:[%s433_s0 + $0x18] sm:$0xff]  ;;  %v15_v11 = vld [vmem:[%s433_s0 + $0x20] sm:$0xff]  ;;  %v16_v14 = vld [vmem:[%s433_s0 + $0x28] sm:$0xff] }
   0x4   :  { %v45_v10 = vld [vmem:[%s434_s1 + $0x18] sm:$0xff]  ;;  %v46_v13 = vld [vmem:[%s434_s1 + $0x20] sm:$0xff]  ;;  %v47_v15 = vld [vmem:[%s434_s1 + $0x28] sm:$0xff] }
   0x5   :  { %104 = vst [vmem:[%s435_s2] sm:$0xff] %v73_v3  ;;  %v76_v12 = vadd.f32 %v45_v10, %v14_v9  ;;  %105 = vst [vmem:[%s435_s2 + $0x8] sm:$0xff] %v74_v7  ;;  %v77_v16 = vadd.f32 %v46_v13, %v15_v11  ;;  %v78_v17 = vadd.f32 %v47_v15, %v16_v14  ;;  %v17_v18 = vld [vmem:[%s433_s0 + $0x30] sm:$0xff]  ;;  %v18_v20 = vld [vmem:[%s433_s0 + $0x38] sm:$0xff] }
   0x6   :  { %106 = vst [vmem:[%s435_s2 + $0x10] sm:$0xff] %v75_v8  ;;  %v48_v19 = vld [vmem:[%s434_s1 + $0x30] sm:$0xff]  ;;  %v49_v22 = vld [vmem:[%s434_s1 + $0x38] sm:$0xff]  ;;  %v19_v23 = vld [vmem:[%s433_s0 + $0x40] sm:$0xff] }
   0x7   :  { %107 = vst [vmem:[%s435_s2 + $0x18] sm:$0xff] %v76_v12  ;;  %v79_v21 = vadd.f32 %v48_v19, %v17_v18  ;;  %v50_v24 = vld [vmem:[%s434_s1 + $0x40] sm:$0xff]  ;;  %108 = vst [vmem:[%s435_s2 + $0x20] sm:$0xff] %v77_v16  ;;  %v80_v25 = vadd.f32 %v49_v22, %v18_v20  ;;  %v20_v27 = vld [vmem:[%s433_s0 + $0x48] sm:$0xff] }
   0x8   :  { %109 = vst [vmem:[%s435_s2 + $0x28] sm:$0xff] %v78_v17  ;;  %v81_v26 = vadd.f32 %v50_v24, %v19_v23  ;;  %v51_v28 = vld [vmem:[%s434_s1 + $0x48] sm:$0xff]  ;;  %v21_v29 = vld [vmem:[%s433_s0 + $0x50] sm:$0xff]  ;;  %v22_v32 = vld [vmem:[%s433_s0 + $0x58] sm:$0xff] }
   0x9   :  { %110 = vst [vmem:[%s435_s2 + $0x30] sm:$0xff] %v79_v21  ;;  %v82_v30 = vadd.f32 %v51_v28, %v20_v27  ;;  %v52_v31 = vld [vmem:[%s434_s1 + $0x50] sm:$0xff]  ;;  %v53_v33 = vld [vmem:[%s434_s1 + $0x58] sm:$0xff]  ;;  %111 = vst [vmem:[%s435_s2 + $0x38] sm:$0xff] %v80_v25 }
   0xa   :  { %112 = vst [vmem:[%s435_s2 + $0x40] sm:$0xff] %v81_v26  ;;  %v83_v34 = vadd.f32 %v52_v31, %v21_v29  ;;  %v84_v35 = vadd.f32 %v53_v33, %v22_v32  ;;  %v23_v36 = vld [vmem:[%s433_s0 + $0x60] sm:$0xff]  ;;  %v24_v38 = vld [vmem:[%s433_s0 + $0x68] sm:$0xff]  ;;  %v25_v41 = vld [vmem:[%s433_s0 + $0x70] sm:$0xff] }
   0xb   :  { %v54_v37 = vld [vmem:[%s434_s1 + $0x60] sm:$0xff]  ;;  %113 = vst [vmem:[%s435_s2 + $0x48] sm:$0xff] %v82_v30  ;;  %v55_v40 = vld [vmem:[%s434_s1 + $0x68] sm:$0xff]  ;;  %v56_v42 = vld [vmem:[%s434_s1 + $0x70] sm:$0xff] }
   0xc   :  { %v85_v39 = vadd.f32 %v54_v37, %v23_v36  ;;  %114 = vst [vmem:[%s435_s2 + $0x50] sm:$0xff] %v83_v34  ;;  %115 = vst [vmem:[%s435_s2 + $0x58] sm:$0xff] %v84_v35  ;;  %v86_v43 = vadd.f32 %v55_v40, %v24_v38  ;;  %v87_v44 = vadd.f32 %v56_v42, %v25_v41  ;;  %v26_v45 = vld [vmem:[%s433_s0 + $0x78] sm:$0xff]  ;;  %v27_v47 = vld [vmem:[%s433_s0 + $0x80] sm:$0xff] }
   0xd   :  { %v57_v46 = vld [vmem:[%s434_s1 + $0x78] sm:$0xff]  ;;  %v58_v49 = vld [vmem:[%s434_s1 + $0x80] sm:$0xff]  ;;  %v28_v50 = vld [vmem:[%s433_s0 + $0x88] sm:$0xff] }
   0xe   :  { %116 = vst [vmem:[%s435_s2 + $0x60] sm:$0xff] %v85_v39  ;;  %v88_v48 = vadd.f32 %v57_v46, %v26_v45  ;;  %v59_v51 = vld [vmem:[%s434_s1 + $0x88] sm:$0xff]  ;;  %117 = vst [vmem:[%s435_s2 + $0x68] sm:$0xff] %v86_v43  ;;  %v89_v52 = vadd.f32 %v58_v49, %v27_v47  ;;  %v29_v54 = vld [vmem:[%s433_s0 + $0x90] sm:$0xff] }
   0xf   :  { %118 = vst [vmem:[%s435_s2 + $0x70] sm:$0xff] %v87_v44  ;;  %v90_v53 = vadd.f32 %v59_v51, %v28_v50  ;;  %v60_v55 = vld [vmem:[%s434_s1 + $0x90] sm:$0xff]  ;;  %v30_v56 = vld [vmem:[%s433_s0 + $0x98] sm:$0xff]  ;;  %v31_v59 = vld [vmem:[%s433_s0 + $0xa0] sm:$0xff] }
  0x10   :  { %119 = vst [vmem:[%s435_s2 + $0x78] sm:$0xff] %v88_v48  ;;  %v91_v57 = vadd.f32 %v60_v55, %v29_v54  ;;  %v61_v58 = vld [vmem:[%s434_s1 + $0x98] sm:$0xff]  ;;  %v62_v60 = vld [vmem:[%s434_s1 + $0xa0] sm:$0xff]  ;;  %120 = vst [vmem:[%s435_s2 + $0x80] sm:$0xff] %v89_v52 }
  0x11   :  { %121 = vst [vmem:[%s435_s2 + $0x88] sm:$0xff] %v90_v53  ;;  %v92_v61 = vadd.f32 %v61_v58, %v30_v56  ;;  %v93_v62 = vadd.f32 %v62_v60, %v31_v59  ;;  %v32_v63 = vld [vmem:[%s433_s0 + $0xa8] sm:$0xff]  ;;  %v33_v1 = vld [vmem:[%s433_s0 + $0xb0] sm:$0xff]  ;;  %v34_v4 = vld [vmem:[%s433_s0 + $0xb8] sm:$0xff] }
  0x12   :  { %v63_v0 = vld [vmem:[%s434_s1 + $0xa8] sm:$0xff]  ;;  %122 = vst [vmem:[%s435_s2 + $0x90] sm:$0xff] %v91_v57  ;;  %v64_v3 = vld [vmem:[%s434_s1 + $0xb0] sm:$0xff]  ;;  %v65_v5 = vld [vmem:[%s434_s1 + $0xb8] sm:$0xff] }
  0x13   :  { %v94_v2 = vadd.f32 %v63_v0, %v32_v63  ;;  %123 = vst [vmem:[%s435_s2 + $0x98] sm:$0xff] %v92_v61  ;;  %124 = vst [vmem:[%s435_s2 + $0xa0] sm:$0xff] %v93_v62  ;;  %v95_v6 = vadd.f32 %v64_v3, %v33_v1  ;;  %v96_v7 = vadd.f32 %v65_v5, %v34_v4  ;;  %v35_v8 = vld [vmem:[%s433_s0 + $0xc0] sm:$0xff]  ;;  %v36_v10 = vld [vmem:[%s433_s0 + $0xc8] sm:$0xff] }
  0x14   :  { %v66_v9 = vld [vmem:[%s434_s1 + $0xc0] sm:$0xff]  ;;  %v67_v12 = vld [vmem:[%s434_s1 + $0xc8] sm:$0xff]  ;;  %v37_v13 = vld [vmem:[%s433_s0 + $0xd0] sm:$0xff] }
  0x15   :  { %125 = vst [vmem:[%s435_s2 + $0xa8] sm:$0xff] %v94_v2  ;;  %v97_v11 = vadd.f32 %v66_v9, %v35_v8  ;;  %v68_v14 = vld [vmem:[%s434_s1 + $0xd0] sm:$0xff]  ;;  %126 = vst [vmem:[%s435_s2 + $0xb0] sm:$0xff] %v95_v6  ;;  %v98_v15 = vadd.f32 %v67_v12, %v36_v10  ;;  %v38_v17 = vld [vmem:[%s433_s0 + $0xd8] sm:$0xff] }
  0x16   :  { %127 = vst [vmem:[%s435_s2 + $0xb8] sm:$0xff] %v96_v7  ;;  %v99_v16 = vadd.f32 %v68_v14, %v37_v13  ;;  %v69_v18 = vld [vmem:[%s434_s1 + $0xd8] sm:$0xff]  ;;  %v39_v19 = vld [vmem:[%s433_s0 + $0xe0] sm:$0xff]  ;;  %v40_v22 = vld [vmem:[%s433_s0 + $0xe8] sm:$0xff] }
  0x17   :  { %128 = vst [vmem:[%s435_s2 + $0xc0] sm:$0xff] %v97_v11  ;;  %v100_v20 = vadd.f32 %v69_v18, %v38_v17  ;;  %v70_v21 = vld [vmem:[%s434_s1 + $0xe0] sm:$0xff]  ;;  %v71_v23 = vld [vmem:[%s434_s1 + $0xe8] sm:$0xff]  ;;  %129 = vst [vmem:[%s435_s2 + $0xc8] sm:$0xff] %v98_v15 }
  0x18   :  { %130 = vst [vmem:[%s435_s2 + $0xd0] sm:$0xff] %v99_v16  ;;  %v101_v24 = vadd.f32 %v70_v21, %v39_v19  ;;  %v102_v25 = vadd.f32 %v71_v23, %v40_v22  ;;  %v41_v26 = vld [vmem:[%s433_s0 + $0xf0] sm:$0x1f] }
  0x19   :  { %v72_v27 = vld [vmem:[%s434_s1 + $0xf0] sm:$0x1f]  ;;  %131 = vst [vmem:[%s435_s2 + $0xd8] sm:$0xff] %v100_v20 }
  0x1a   :  { %v103_v28 = vadd.f32 %v72_v27, %v41_v26  ;;  %132 = vst [vmem:[%s435_s2 + $0xe0] sm:$0xff] %v101_v24  ;;  %133 = vst [vmem:[%s435_s2 + $0xe8] sm:$0xff] %v102_v25 }
  0x1c   :  { %134 = vst [vmem:[%s435_s2 + $0xf0] sm:$0x1f] %v103_v28 }

</bundles_post_ra>
